<compile_context>
chip_gen: v6e
topology: v6e:2x2x1
jax: 0.10.0
libtpu: 0.0.40
codegen_flags: <defaults>
</compile_context>

<pallas_src>
import functools
import math

import jax
import jax.numpy as jnp
from jax.experimental import pallas as pl
from jax.experimental.pallas import tpu as pltpu


def _round_up(x, m):
    return -(-x // m) * m


@functools.lru_cache(maxsize=None)
def _vmem_limit_bytes():
    """Generation-aware scoped-VMEM limit (raised above the 16/32 MiB defaults)."""
    try:
        cap = int(pltpu.get_tpu_info().vmem_capacity_bytes)
    except Exception:
        cap = 64 * 1024 * 1024  # conservative: assume v7x-sized per-core VMEM
    # ~3/4 of physical VMEM, capped at 100 MiB: ~48 MiB on v7x, ~96 MiB on v5e/v6e.
    return min((cap * 3) // 4, 100 * 1024 * 1024)


# ----------------------------------------------------------------------------
# Shared per-tile compute
# ----------------------------------------------------------------------------
def _ce_core(xv, t1, w):
    """Per-pixel weighted NLL reduced over the class axis (axis 0).

    xv : Ref view of shape (C, *tail), native logits dtype.
    t1 : (1, *tail) int32 targets (broadcastable against (C, *tail)).
    w  : f32 per-class weights, shape (C, 1[, 1]) (broadcastable against (C, *tail)).
    Returns (loss, wt), both (1, *tail) f32.
    """
    # Max / centering in the native dtype (bf16 VPU on v6e/v7x); only the exp input
    # and the small (1, *tail) results are upcast to f32.  xv is re-read per
    # sub-expression so no full-tile f32 copy has to stay live across the body.
    m = jnp.max(xv[...], axis=0, keepdims=True)                              # (1,*tail)
    s = jnp.sum(jnp.exp((xv[...] - m).astype(jnp.float32)),
                axis=0, keepdims=True)                                       # (1,*tail)
    lse = jnp.log(s) + m.astype(jnp.float32)

    # One-hot select (bool mask + where) of the target logit and target-class weight.
    cls = jax.lax.broadcasted_iota(jnp.int32, xv.shape, 0)
    onehot = cls == t1
    picked = jnp.sum(jnp.where(onehot, xv[...], jnp.zeros([], xv.dtype)),
                     axis=0, keepdims=True).astype(jnp.float32)
    # Targets outside [0, C) give an all-false onehot -> wt == 0 -> excluded from
    # numerator and denominator (ignore_index-like behaviour; kept deliberately).
    wt = jnp.sum(jnp.where(onehot, w, 0.0), axis=0, keepdims=True)
    return (lse - picked) * wt, wt


def _write_partial_slab(part_ref, loss, wt):
    """Single merged (1,1,8,128) output slab: loss sum at [0,0], weight sum at [0,1]."""
    lsum = jnp.sum(loss).reshape(1, 1)
    wsum = jnp.sum(wt).reshape(1, 1)
    r = jax.lax.broadcasted_iota(jnp.int32, (8, 128), 0)
    c = jax.lax.broadcasted_iota(jnp.int32, (8, 128), 1)
    row0 = r == 0
    slab = (jnp.where(row0 & (c == 0), lsum, 0.0)
            + jnp.where(row0 & (c == 1), wsum, 0.0))
    part_ref[...] = slab[None, None]


# ----------------------------------------------------------------------------
# Dense layout kernels: x block (1, C, tb, 128), t block (1, tb, 128)
# ----------------------------------------------------------------------------
def _wce_partial_dense_kernel(x_ref, t_ref, w_ref, part_ref, *, hb, tb):
    loss, wt = _ce_core(x_ref.at[0], t_ref[...], w_ref[...].astype(jnp.float32))
    if hb % tb:  # static: only shapes with a ragged last tile pay for the mask
        row = (jax.lax.broadcasted_iota(jnp.int32, loss.shape, 1)
               + pl.program_id(1) * tb)
        valid = row < hb
        loss = jnp.where(valid, loss, 0.0)
        wt = jnp.where(valid, wt, 0.0)
    _write_partial_slab(part_ref, loss, wt)


def _wce_map_dense_kernel(x_ref, t_ref, w_ref, loss_ref):
    loss, _ = _ce_core(x_ref.at[0], t_ref[...], w_ref[...].astype(jnp.float32))
    loss_ref[...] = loss.astype(loss_ref.dtype)   # ragged tail store is masked by Pallas


# ----------------------------------------------------------------------------
# Flat fallback kernels (HW % 128 != 0): x block (1, C, t_hw), t block (1, 1, t_hw)
# ----------------------------------------------------------------------------
def _wce_partial_flat_kernel(x_ref, t_ref, w_ref, part_ref, *, hw, t_hw):
    loss, wt = _ce_core(x_ref.at[0], t_ref[0], w_ref[...].astype(jnp.float32))
    if hw % t_hw:
        col = (jax.lax.broadcasted_iota(jnp.int32, loss.shape, 1)
               + pl.program_id(1) * t_hw)
        valid = col < hw
        loss = jnp.where(valid, loss, 0.0)
        wt = jnp.where(valid, wt, 0.0)
    _write_partial_slab(part_ref, loss, wt)


def _wce_map_flat_kernel(x_ref, t_ref, w_ref, loss_ref):
    loss, _ = _ce_core(x_ref.at[0], t_ref[0], w_ref[...].astype(jnp.float32))
    loss_ref[...] = loss[None].astype(loss_ref.dtype)


# ----------------------------------------------------------------------------
# VMEM-padding-aware tile pickers
# ----------------------------------------------------------------------------
def _pick_dense_tile(hb, c, itemsize, out_itemsize, vmem_limit):
    """Rows-of-128-lanes per grid step for the dense layout.

    Per 8-sublane group budget: 2x double-buffered logits + 2x int32 targets
    + ~4 full-tile f32 temporaries inside _ce_core + 2x output buffers.
    """
    per_group = 8 * 128 * (2 * c * itemsize + 2 * 4 + 4 * c * 4 + 2 * out_itemsize)
    budget = vmem_limit // 2          # headroom for compiler scratch / pipeline state
    tb = 8 * max(1, budget // per_group)
    if hb <= tb:
        return hb, 1                  # single full-extent block (always layout-legal)
    return tb, -(-hb // tb)           # multiple-of-8 rows, ragged tail masked


def _pick_flat_tile(hw, c, itemsize, out_itemsize, vmem_limit):
    """Lane-tile width for the HW % 128 != 0 fallback layout (sublane-padded blocks)."""
    sub = max(8, 32 // max(1, itemsize))          # sublane packing: 8 f32 / 16 bf16
    c_pad = _round_up(c, sub)
    per_col = (2 * c_pad * itemsize + 2 * 8 * 4 + 4 * c_pad * 4 + 2 * 8 * out_itemsize)
    budget = vmem_limit // 2
    t = max(128, (budget // per_col) // 128 * 128)
    if hw <= t:
        return hw, 1
    return t, -(-hw // t)


# ----------------------------------------------------------------------------
# Wrapper
# ----------------------------------------------------------------------------
@functools.partial(jax.jit, static_argnames=("reduction",))
def weighted_cross_entropy_loss(inputs, targets, weight=None, reduction="mean"):
    """Matches F.cross_entropy(inputs, targets, weight=weight, reduction='none')
    followed by torch.mean / torch.sum (PyTorch's weighted mean divides by the
    sum of the per-sample class weights)."""
    N, C = inputs.shape[0], inputs.shape[1]
    HW = int(math.prod(inputs.shape[2:])) if inputs.ndim > 2 else 1
    itemsize = jnp.dtype(inputs.dtype).itemsize
    out_dtype = inputs.dtype if jnp.issubdtype(inputs.dtype, jnp.floating) else jnp.float32

    scalar_red = reduction in ("mean", "sum")
    out_itemsize = 4 if scalar_red else jnp.dtype(out_dtype).itemsize
    vmem_limit = _vmem_limit_bytes()
    cparams = pltpu.CompilerParams(
        dimension_semantics=("parallel", "parallel"),
        vmem_limit_bytes=vmem_limit)
    cost = pl.CostEstimate(
        flops=8 * N * C * HW,
        transcendentals=N * C * HW,
        bytes_accessed=N * C * HW * itemsize + N * HW * 4 + N * HW * out_itemsize)

    w_flat = (jnp.ones((C,), jnp.float32) if weight is None
              else jnp.asarray(weight, jnp.float32).reshape(C))

    dense = (HW % 128 == 0) and (HW >= 128)

    if dense:
        HB = HW // 128
        x = inputs.reshape(N, C, HB, 128)                    # pure view
        t = targets.reshape(N, HB, 128).astype(jnp.int32)    # pure view (if already int32)
        w = w_flat.reshape(C, 1, 1)
        tb, grid_h = _pick_dense_tile(HB, C, itemsize, out_itemsize, vmem_limit)
        grid = (N, grid_h)
        in_specs = [
            pl.BlockSpec((1, C, tb, 128), lambda n, h: (n, 0, h, 0)),   # logits
            pl.BlockSpec((1, tb, 128), lambda n, h: (n, h, 0)),         # targets
            pl.BlockSpec((C, 1, 1), lambda n, h: (0, 0, 0)),            # class weights
        ]
        if scalar_red:
            part = pl.pallas_call(
                functools.partial(_wce_partial_dense_kernel, hb=HB, tb=tb),
                out_shape=jax.ShapeDtypeStruct((N, grid_h, 8, 128), jnp.float32),
                grid_spec=pltpu.PrefetchScalarGridSpec(
                    num_scalar_prefetch=0, grid=grid, in_specs=in_specs,
                    out_specs=pl.BlockSpec((1, 1, 8, 128), lambda n, h: (n, h, 0, 0))),
                compiler_params=cparams, cost_estimate=cost,
            )(x, t, w)
            loss_sum = jnp.sum(part[:, :, 0, 0])
            if reduction == "sum":
                return loss_sum
            return loss_sum / jnp.sum(part[:, :, 0, 1])

        loss_map = pl.pallas_call(
            _wce_map_dense_kernel,
            out_shape=jax.ShapeDtypeStruct((N, HB, 128), out_dtype),
            grid_spec=pltpu.PrefetchScalarGridSpec(
                num_scalar_prefetch=0, grid=grid, in_specs=in_specs,
                out_specs=pl.BlockSpec((1, tb, 128), lambda n, h: (n, h, 0))),
            compiler_params=cparams, cost_estimate=cost,
        )(x, t, w)
        return loss_map.reshape(targets.shape)

    # ---- fallback layout: HW not a multiple of 128 --------------------------
    x = inputs.reshape(N, C, HW)
    t = targets.reshape(N, 1, HW).astype(jnp.int32)
    w = w_flat.reshape(C, 1)
    t_hw, grid_h = _pick_flat_tile(HW, C, itemsize, out_itemsize, vmem_limit)
    grid = (N, grid_h)
    in_specs = [
        pl.BlockSpec((1, C, t_hw), lambda n, h: (n, 0, h)),
        pl.BlockSpec((1, 1, t_hw), lambda n, h: (n, 0, h)),
        pl.BlockSpec((C, 1), lambda n, h: (0, 0)),
    ]
    if scalar_red:
        part = pl.pallas_call(
            functools.partial(_wce_partial_flat_kernel, hw=HW, t_hw=t_hw),
            out_shape=jax.ShapeDtypeStruct((N, grid_h, 8, 128), jnp.float32),
            grid_spec=pltpu.PrefetchScalarGridSpec(
                num_scalar_prefetch=0, grid=grid, in_specs=in_specs,
                out_specs=pl.BlockSpec((1, 1, 8, 128), lambda n, h: (n, h, 0, 0))),
            compiler_params=cparams, cost_estimate=cost,
        )(x, t, w)
        loss_sum = jnp.sum(part[:, :, 0, 0])
        if reduction == "sum":
            return loss_sum
        return loss_sum / jnp.sum(part[:, :, 0, 1])

    loss_map = pl.pallas_call(
        _wce_map_flat_kernel,
        out_shape=jax.ShapeDtypeStruct((N, 1, HW), out_dtype),
        grid_spec=pltpu.PrefetchScalarGridSpec(
            num_scalar_prefetch=0, grid=grid, in_specs=in_specs,
            out_specs=pl.BlockSpec((1, 1, t_hw), lambda n, h: (n, 0, h))),
        compiler_params=cparams, cost_estimate=cost,
    )(x, t, w)
    return loss_map.reshape(targets.shape)


# ----------------------------------------------------------------------------
# Pure-JAX reference & tests
# ----------------------------------------------------------------------------
def _reference(inputs, targets, weight=None, reduction="mean"):
    """Pure-JAX reference mirroring F.cross_entropy semantics."""
    C = inputs.shape[1]
    x = jnp.moveaxis(inputs, 1, -1).reshape(-1, C).astype(jnp.float32)
    t = targets.reshape(-1).astype(jnp.int32)
    logp = jax.nn.log_softmax(x, axis=-1)
    nll = -jnp.take_along_axis(logp, t[:, None], axis=-1)[:, 0]
    if weight is None:
        w_t = jnp.ones_like(nll)
    else:
        w_t = jnp.asarray(weight, jnp.float32)[t]
    loss = nll * w_t
    if reduction == "mean":
        return jnp.sum(loss) / jnp.sum(w_t)
    elif reduction == "sum":
        return jnp.sum(loss)
    return loss


if __name__ == "__main__":
    key = jax.random.PRNGKey(0)
    k1, k2, k3 = jax.random.split(key, 3)

    N, C, H, W = 2, 4, 16, 16
    inputs = jax.random.normal(k1, (N, C, H, W), dtype=jnp.float32)
    targets = jax.random.randint(k2, (N, H, W), 0, C, dtype=jnp.int32)
    # Deterministic class weights (synthetic; module would receive these in __init__).
    class_weight = jnp.linspace(0.5, 2.0, C, dtype=jnp.float32)

    # Weighted mean (dense layout path).
    out = jax.block_until_ready(
        weighted_cross_entropy_loss(inputs, targets, weight=class_weight,
                                    reduction="mean"))
    ref = _reference(inputs, targets, weight=class_weight, reduction="mean")
    assert jnp.allclose(out, ref, rtol=1e-5, atol=1e-5), (out, ref)

    # Unweighted mean (module defaults).
    out2 = jax.block_until_ready(
        weighted_cross_entropy_loss(inputs, targets, weight=None, reduction="mean"))
    ref2 = _reference(inputs, targets, weight=None, reduction="mean")
    assert jnp.allclose(out2, ref2, rtol=1e-5, atol=1e-5), (out2, ref2)

    # Weighted sum.
    out3 = jax.block_until_ready(
        weighted_cross_entropy_loss(inputs, targets, weight=class_weight,
                                    reduction="sum"))
    ref3 = _reference(inputs, targets, weight=class_weight, reduction="sum")
    assert jnp.allclose(out3, ref3, rtol=1e-5, atol=1e-5), (out3, ref3)

    # reduction='none' (per-pixel loss map).
    out4 = jax.block_until_ready(
        weighted_cross_entropy_loss(inputs, targets, weight=class_weight,
                                    reduction="none"))
    ref4 = _reference(inputs, targets, weight=class_weight,
                      reduction="none").reshape(N, H, W)
    assert jnp.allclose(out4, ref4, rtol=1e-5, atol=1e-5), (out4, ref4)

    # Fallback (flat) layout: HW not a multiple of 128.
    Hs, Ws = 10, 10
    inputs_f = jax.random.normal(k3, (N, C, Hs, Ws), dtype=jnp.float32)
    targets_f = jax.random.randint(k2, (N, Hs, Ws), 0, C, dtype=jnp.int32)
    out5 = jax.block_until_ready(
        weighted_cross_entropy_loss(inputs_f, targets_f, weight=class_weight,
                                    reduction="mean"))
    ref5 = _reference(inputs_f, targets_f, weight=class_weight, reduction="mean")
    assert jnp.allclose(out5, ref5, rtol=1e-5, atol=1e-5), (out5, ref5)

    print("KERNEL_OK")
</pallas_src>

<mosaic_0001>
module attributes {stable_mosaic.version = 11 : i64} {
  func.func @_wce_partial_dense_kernel(%arg0: i32, %arg1: i32, %arg2: memref<1x4x2x128xf32, #tpu.memory_space<vmem>>, %arg3: memref<1x2x128xi32, #tpu.memory_space<vmem>>, %arg4: memref<4x1x1xf32, #tpu.memory_space<vmem>>, %arg5: memref<1x1x8x128xf32, #tpu.memory_space<vmem>>) attributes {dimension_semantics = [#tpu.dimension_semantics<parallel>, #tpu.dimension_semantics<parallel>], iteration_bounds = array<i64: 2, 1>, scalar_prefetch = 0 : i64, scratch_operands = 0 : i64, tpu.core_type = #tpu.core_type<tc>, window_params = [{transform_indices = @transform_0, window_bounds = array<i64: 1, 4, 2, 128>}, {transform_indices = @transform_1, window_bounds = array<i64: 1, 2, 128>}, {pipeline_mode = #tpu.pipeline_mode<synchronous>, transform_indices = @transform_2, window_bounds = array<i64: 4, 1, 1>}, {transform_indices = @transform_3, window_bounds = array<i64: 1, 1, 8, 128>}]} {
    %c0 = arith.constant 0 : index
    %c0_0 = arith.constant 0 : index
    %c0_1 = arith.constant 0 : index
    %0 = vector.load %arg3[%c0, %c0_0, %c0_1] : memref<1x2x128xi32, #tpu.memory_space<vmem>>, vector<1x2x128xi32>
    %c0_2 = arith.constant 0 : index
    %c0_3 = arith.constant 0 : index
    %c0_4 = arith.constant 0 : index
    %1 = vector.load %arg4[%c0_2, %c0_3, %c0_4] : memref<4x1x1xf32, #tpu.memory_space<vmem>>, vector<4x1x1xf32>
    %c0_5 = arith.constant 0 : index
    %c0_6 = arith.constant 0 : index
    %c0_7 = arith.constant 0 : index
    %c0_8 = arith.constant 0 : index
    %2 = vector.load %arg2[%c0_5, %c0_6, %c0_7, %c0_8] : memref<1x4x2x128xf32, #tpu.memory_space<vmem>>, vector<1x4x2x128xf32>
    %3 = vector.shape_cast %2 : vector<1x4x2x128xf32> to vector<4x2x128xf32>
    %cst = arith.constant dense<0xFF800000> : vector<2x128xf32>
    %4 = vector.multi_reduction <maximumf>, %3, %cst [0] : vector<4x2x128xf32> to vector<2x128xf32>
    %5 = vector.shape_cast %4 : vector<2x128xf32> to vector<1x2x128xf32>
    %c0_9 = arith.constant 0 : index
    %c0_10 = arith.constant 0 : index
    %c0_11 = arith.constant 0 : index
    %c0_12 = arith.constant 0 : index
    %6 = vector.load %arg2[%c0_9, %c0_10, %c0_11, %c0_12] : memref<1x4x2x128xf32, #tpu.memory_space<vmem>>, vector<1x4x2x128xf32>
    %7 = vector.shape_cast %6 : vector<1x4x2x128xf32> to vector<4x2x128xf32>
    %8 = vector.broadcast %5 : vector<1x2x128xf32> to vector<4x2x128xf32>
    %9 = arith.subf %7, %8 : vector<4x2x128xf32>
    %10 = math.exp %9 : vector<4x2x128xf32>
    %cst_13 = arith.constant dense<0.000000e+00> : vector<2x128xf32>
    %11 = vector.multi_reduction <add>, %10, %cst_13 [0] : vector<4x2x128xf32> to vector<2x128xf32>
    %12 = vector.shape_cast %11 : vector<2x128xf32> to vector<1x2x128xf32>
    %13 = math.log %12 : vector<1x2x128xf32>
    %14 = arith.addf %13, %5 : vector<1x2x128xf32>
    %15 = tpu.iota {dimensions = array<i32: 0>} : vector<4x2x128xi32>
    %16 = vector.broadcast %0 : vector<1x2x128xi32> to vector<4x2x128xi32>
    %17 = arith.cmpi eq, %15, %16 : vector<4x2x128xi32>
    %c0_14 = arith.constant 0 : index
    %c0_15 = arith.constant 0 : index
    %c0_16 = arith.constant 0 : index
    %c0_17 = arith.constant 0 : index
    %18 = vector.load %arg2[%c0_14, %c0_15, %c0_16, %c0_17] : memref<1x4x2x128xf32, #tpu.memory_space<vmem>>, vector<1x4x2x128xf32>
    %19 = vector.shape_cast %18 : vector<1x4x2x128xf32> to vector<4x2x128xf32>
    %cst_18 = arith.constant 0.000000e+00 : f32
    %20 = vector.broadcast %cst_18 : f32 to vector<4x2x128xf32>
    %21 = arith.select %17, %19, %20 : vector<4x2x128xi1>, vector<4x2x128xf32>
    %cst_19 = arith.constant dense<0.000000e+00> : vector<2x128xf32>
    %22 = vector.multi_reduction <add>, %21, %cst_19 [0] : vector<4x2x128xf32> to vector<2x128xf32>
    %23 = vector.shape_cast %22 : vector<2x128xf32> to vector<1x2x128xf32>
    %cst_20 = arith.constant 0.000000e+00 : f32
    %24 = vector.shape_cast %1 : vector<4x1x1xf32> to vector<4x1x1xf32>
    %25 = vector.broadcast %24 : vector<4x1x1xf32> to vector<4x2x128xf32>
    %26 = vector.broadcast %cst_20 : f32 to vector<4x2x128xf32>
    %27 = arith.select %17, %25, %26 : vector<4x2x128xi1>, vector<4x2x128xf32>
    %cst_21 = arith.constant dense<0.000000e+00> : vector<2x128xf32>
    %28 = vector.multi_reduction <add>, %27, %cst_21 [0] : vector<4x2x128xf32> to vector<2x128xf32>
    %29 = vector.shape_cast %28 : vector<2x128xf32> to vector<1x2x128xf32>
    %30 = arith.subf %14, %23 : vector<1x2x128xf32>
    %31 = arith.mulf %30, %29 : vector<1x2x128xf32>
    %32 = vector.shape_cast %31 : vector<1x2x128xf32> to vector<1x1x2x128xf32>
    %cst_22 = arith.constant dense<0.000000e+00> : vector<1xf32>
    %33 = vector.multi_reduction <add>, %32, %cst_22 [1, 2, 3] : vector<1x1x2x128xf32> to vector<1xf32>
    %34 = vector.shape_cast %33 : vector<1xf32> to vector<1x1x1x1xf32>
    %35 = vector.extract %34[0, 0, 0, 0] : f32 from vector<1x1x1x1xf32>
    %36 = vector.broadcast %35 : f32 to vector<1x1xf32>
    %37 = vector.shape_cast %29 : vector<1x2x128xf32> to vector<1x1x2x128xf32>
    %cst_23 = arith.constant dense<0.000000e+00> : vector<1xf32>
    %38 = vector.multi_reduction <add>, %37, %cst_23 [1, 2, 3] : vector<1x1x2x128xf32> to vector<1xf32>
    %39 = vector.shape_cast %38 : vector<1xf32> to vector<1x1x1x1xf32>
    %40 = vector.extract %39[0, 0, 0, 0] : f32 from vector<1x1x1x1xf32>
    %41 = vector.broadcast %40 : f32 to vector<1x1xf32>
    %42 = tpu.iota {dimensions = array<i32: 0>} : vector<8x128xi32>
    %43 = tpu.iota {dimensions = array<i32: 1>} : vector<8x128xi32>
    %c0_i32 = arith.constant 0 : i32
    %44 = vector.broadcast %c0_i32 : i32 to vector<8x128xi32>
    %45 = arith.cmpi eq, %42, %44 : vector<8x128xi32>
    %c0_i32_24 = arith.constant 0 : i32
    %46 = vector.broadcast %c0_i32_24 : i32 to vector<8x128xi32>
    %47 = arith.cmpi eq, %43, %46 : vector<8x128xi32>
    %48 = arith.andi %45, %47 : vector<8x128xi1>
    %cst_25 = arith.constant 0.000000e+00 : f32
    %49 = vector.shape_cast %36 : vector<1x1xf32> to vector<1x1xf32>
    %50 = vector.broadcast %49 : vector<1x1xf32> to vector<8x128xf32>
    %51 = vector.broadcast %cst_25 : f32 to vector<8x128xf32>
    %52 = arith.select %48, %50, %51 : vector<8x128xi1>, vector<8x128xf32>
    %c1_i32 = arith.constant 1 : i32
    %53 = vector.broadcast %c1_i32 : i32 to vector<8x128xi32>
    %54 = arith.cmpi eq, %43, %53 : vector<8x128xi32>
    %55 = arith.andi %45, %54 : vector<8x128xi1>
    %cst_26 = arith.constant 0.000000e+00 : f32
    %56 = vector.shape_cast %41 : vector<1x1xf32> to vector<1x1xf32>
    %57 = vector.broadcast %56 : vector<1x1xf32> to vector<8x128xf32>
    %58 = vector.broadcast %cst_26 : f32 to vector<8x128xf32>
    %59 = arith.select %55, %57, %58 : vector<8x128xi1>, vector<8x128xf32>
    %60 = arith.addf %52, %59 : vector<8x128xf32>
    %61 = vector.shape_cast %60 : vector<8x128xf32> to vector<1x1x8x128xf32>
    %c0_27 = arith.constant 0 : index
    %c0_28 = arith.constant 0 : index
    %c0_29 = arith.constant 0 : index
    %c0_30 = arith.constant 0 : index
    %62 = vector.load %arg5[%c0_27, %c0_28, %c0_29, %c0_30] : memref<1x1x8x128xf32, #tpu.memory_space<vmem>>, vector<1x1x8x128xf32>
    tpu.vector_store %arg5[%c0_27, %c0_28, %c0_29, %c0_30], %61 {strides = array<i32>} : memref<1x1x8x128xf32, #tpu.memory_space<vmem>>, vector<1x1x8x128xf32>,
    return
  }
  func.func @transform_0(%arg0: i32, %arg1: i32) -> (i32, i32, i32, i32) {
    %c0_i32 = arith.constant 0 : i32
    %c0_i32_0 = arith.constant 0 : i32
    %c0_i32_1 = arith.constant 0 : i32
    return %arg0, %c0_i32, %arg1, %c0_i32_0 : i32, i32, i32, i32
  }
  func.func @transform_1(%arg0: i32, %arg1: i32) -> (i32, i32, i32) {
    %c0_i32 = arith.constant 0 : i32
    %c0_i32_0 = arith.constant 0 : i32
    return %arg0, %arg1, %c0_i32 : i32, i32, i32
  }
  func.func @transform_2(%arg0: i32, %arg1: i32) -> (i32, i32, i32) {
    %c0_i32 = arith.constant 0 : i32
    %c0_i32_0 = arith.constant 0 : i32
    %c0_i32_1 = arith.constant 0 : i32
    %c0_i32_2 = arith.constant 0 : i32
    return %c0_i32, %c0_i32_0, %c0_i32_1 : i32, i32, i32
  }
  func.func @transform_3(%arg0: i32, %arg1: i32) -> (i32, i32, i32, i32) {
    %c0_i32 = arith.constant 0 : i32
    %c0_i32_0 = arith.constant 0 : i32
    %c0_i32_1 = arith.constant 0 : i32
    return %arg0, %arg1, %c0_i32, %c0_i32_0 : i32, i32, i32, i32
  }
}

</mosaic_0001>

<bundles_post_ra>
// kernel: weighted_cross_entropy_loss.1
= control target key start
LH: loop header
LB: loop body
LE: loop exit
PB: predicated region body
PF: predicated region fallthrough
CT: control target
= control target key end

     0   :  { %s560_s12 = smov 0   ;;  %s562_s13 = smov 0   ;;  %s642_s0 = inlined_call_operand.vmem [shape: f32[2,4,2,128], index: 0, kind: input, shape index: {}]   ;;  %s643_s1 = inlined_call_operand.vmem [shape: s32[2,2,128], index: 1, kind: input, shape index: {}]   ;;  %s644_s2 = inlined_call_operand.vmem [shape: f32[4,1,1], index: 2, kind: input, shape index: {}]   ;;  %s645_s3 = inlined_call_operand.vmem [shape: f32[2,1,8,128], index: 3, kind: output, shape index: {}]  }
   0x1   :  { %s564_s14 = smov 0  }
   0x2 LB: > { %s25_s15 = sadd.s32 1, %s533_s13  ;;  %p462_p0 = scmp.ge.s32.totalorder %s537_s14, 1  ;;  %s537_s14 = sphi %s564_s14, %s13_s14   ;;  %s533_s13 = sphi %s562_s13, %s647_s13   ;;  %s529_s12 = sphi %s560_s12, %s646_s12  }
   0x3   : > { %p27_p1 = scmp.ge.s32.totalorder %s25_s15, 2  ;;  %p170_p2 = scmp.lt.s32.totalorder %s537_s14, 3 }
   0x5   : > { %s649_s15 = smov (%p27_p1, %s25_s15), 0  ;;  %p171_p3 = pnand %p462_p0, %p170_p2 }
   0x6   : > { %p206_p4 = scmp.lt.s32.totalorder (!%p171_p3), %s529_s12, 1 }
   0x7   : > { %174 = sbr.rel (%p171_p3) target bundleno = 359 (0x167), region = 32 }
   0xc   : > { %v469_v0 = vld [vmem:[%s644_s2 + $0x2] ss:$0 sm:$0xff]  ;;  %v467_v1 = vld [vmem:[%s644_s2] ss:$0 sm:$0xff]  ;;  %v539_v2 = vmov 0   ;;  %s651_s12 = smov (!%p206_p4, %s529_s12), 1 }
   0xd   : > { %504 = vset.pattern.permute.xlu1 %v539_v2  ;;  %503 = vset.pattern.permute.xlu0 %v539_v2  ;;  %v470_v3 = vld [vmem:[%s644_s2 + $0x3] ss:$0 sm:$0xff]  ;;  %v468_v4 = vld [vmem:[%s644_s2 + $0x1] ss:$0 sm:$0xff]  ;;  %s473_s24 = sshll.u32 %s651_s12, 3  ;;  %vm237_vm0 = vcmask 1041408  }
   0xe   : > { %311 = vperm.xlu1 %504, %v469_v0   ;;  %303 = vperm.xlu0 %503, %v467_v1   ;;  %s213_s27 = scalar_lea.vmem %s642_s0, %s473_s24  ;;  %s465_s28 = sshll.u32 %s651_s12, 1 }
   0xf   : > { %v235_v5 = vld [vmem:[%s213_s27 + $0x4] sm:$0x3]  ;;  %v233_v6 = vld [vmem:[%s213_s27] sm:$0x3]  ;;  %v236_v7 = vld [vmem:[%s213_s27 + $0x6] sm:$0x3]  ;;  %s220_s4 = scalar_lea.vmem %s643_s1, %s465_s28  ;;  %s227_s9 = scalar_lea.vmem %s645_s3, %s473_s24 }
  0x10   : > { %v234_v8 = vld [vmem:[%s213_s27 + $0x2] sm:$0x3]  ;;  %v240_v9 = vsel %vm237_vm0, %v235_v5, -inf  ;;  %v238_v10 = vsel %vm237_vm0, %v233_v6, -inf  ;;  %v241_v11 = vsel %vm237_vm0, %v236_v7, -inf }
  0x11   : > { %v239_v12 = vsel %vm237_vm0, %v234_v8, -inf  ;;  %v243_v13 = vmax.f32 %v240_v9, %v241_v11  ;;  %v228_v35 = vld [vmem:[%s220_s4] sm:$0x3] }
  0x12   : > { %315 = vperm.xlu1 %504, %v470_v3   ;;  %307 = vperm.xlu0 %503, %v468_v4   ;;  %v242_v14 = vmax.f32 %v238_v10, %v239_v12  ;;  %vm268_vm1 = vcmp.eq.s32.totalorder %v228_v35, 1  ;;  %vm267_vm2 = vcmp.eq.s32.totalorder %v228_v35, 0  ;;  %vm269_vm3 = vcmp.eq.s32.totalorder %v228_v35, 2 }
  0x13   : > { %v271_v36 = vsel %vm267_vm2, %v233_v6, 0.0  ;;  %v272_v37 = vsel %vm268_vm1, %v234_v8, 0.0  ;;  %v273_v40 = vsel %vm269_vm3, %v235_v5, 0.0  ;;  %vm270_vm4 = vcmp.eq.s32.totalorder %v228_v35, 3 }
  0x14   : > { %v244_v15 = vmax.f32 %v242_v14, %v243_v13  ;;  %v275_v38 = vsel %vm237_vm0, %v271_v36, 0.0  ;;  %v276_v39 = vsel %vm237_vm0, %v272_v37, 0.0  ;;  %v278_v43 = vsel %vm237_vm0, %v273_v40, 0.0 }
  0x15   : > { %v277_v41 = vadd.f32 %v276_v39, %v275_v38  ;;  %v274_v44 = vsel %vm270_vm4, %v236_v7, 0.0 }
  0x16   : > { %v245_v16 = vsub.f32 %v233_v6, %v244_v15  ;;  %v246_v17 = vsub.f32 %v234_v8, %v244_v15  ;;  %v247_v19 = vsub.f32 %v235_v5, %v244_v15  ;;  %v248_v21 = vsub.f32 %v236_v7, %v244_v15 }
  0x17   : > { %v279_v47 = vadd.f32 %v278_v43, %v277_v41  ;;  %v280_v49 = vsel %vm237_vm0, %v274_v44, 0.0 }
  0x18   : > { %v249_v18 = vmul.f32 1.442695, %v245_v16  ;;  %v251_v20 = vmul.f32 1.442695, %v246_v17  ;;  %v253_v22 = vmul.f32 1.442695, %v247_v19  ;;  %v351_v19 = vlaneseq }
  0x19   : > { %v255_v23 = vmul.f32 1.442695, %v248_v21  ;;  %v281_v56 = vadd.f32 %v280_v49, %v279_v47 }
  0x1a   : > { %505 = vpow2.f32 %v249_v18  ;;  %v354_v21 = vand.u32 127, %v351_v19 }
  0x1b   : > { %507 = vpow2.f32 %v251_v20  ;;  %v352_v20 = vshrl.u32 %v351_v19, 7 }
  0x1c   : > { %509 = vpow2.f32 %v253_v22  ;;  %vm356_vm6 = vcmp.eq.s32.totalorder %v354_v21, 0  ;;  %vm360_vm7 = vcmp.eq.s32.totalorder %v354_v21, 1 }
  0x1d   : > { %511 = vpow2.f32 %v255_v23  ;;  %vm355_vm5 = vcmp.eq.s32.totalorder %v352_v20, 0 }
  0x1e   : > { %vm357_vm8 = vmand %vm355_vm5, %vm356_vm6 }
  0x1f   : > { %vm361_vm9 = vmand %vm355_vm5, %vm360_vm7 }
  0x27   : > { %v506_v24 = vpop.eup %505 }
  0x28   : > { %v508_v25 = vpop.eup %507  ;;  %v257_v26 = vsel %vm237_vm0, %v506_v24, 0.0 }
  0x29   : > { %v258_v27 = vsel %vm237_vm0, %v508_v25, 0.0  ;;  %v510_v28 = vpop.eup %509 }
  0x2a   : > { %v259_v29 = vadd.f32 %v258_v27, %v257_v26  ;;  %v260_v30 = vsel %vm237_vm0, %v510_v28, 0.0  ;;  %v512_v31 = vpop.eup %511 }
  0x2b   : > { %v262_v33 = vsel %vm237_vm0, %v512_v31, 0.0 }
  0x2c   : > { %v261_v32 = vadd.f32 %v260_v30, %v259_v29 }
  0x2e   : > { %v263_v34 = vadd.f32 %v262_v33, %v261_v32 }
  0x30   : > { %513 = vlog2.f32 %v263_v34 }
  0x3d   : > { %v514_v42 = vpop.eup %513 }
  0x3e   : > { %v265_v48 = vmul.f32 0.6931472, %v514_v42 }
  0x40   : > { %v266_v55 = vadd.f32 %v265_v48, %v244_v15 }
  0x42   : > { %v329_v63 = vsub.f32 %v266_v55, %v281_v56 }
  0x89   : > { %v312_v45 = vpop.permute.xlu1 %311  ;;  %v304_v46 = vpop.permute.xlu0 %303 }
  0x8a   : > { %v318_v50 = vsel %vm267_vm2, %v304_v46, 0.0  ;;  %v320_v53 = vsel %vm269_vm3, %v312_v45, 0.0 }
  0x8b   : > { %v322_v57 = vsel %vm237_vm0, %v318_v50, 0.0  ;;  %v325_v61 = vsel %vm237_vm0, %v320_v53, 0.0 }
  0x8d   : > { %v316_v51 = vpop.permute.xlu1 %315  ;;  %v308_v52 = vpop.permute.xlu0 %307 }
  0x8e   : > { %v319_v54 = vsel %vm268_vm1, %v308_v52, 0.0  ;;  %v321_v59 = vsel %vm270_vm4, %v316_v51, 0.0 }
  0x8f   : > { %v323_v58 = vsel %vm237_vm0, %v319_v54, 0.0  ;;  %v327_v0 = vsel %vm237_vm0, %v321_v59, 0.0 }
  0x90   : > { %v324_v60 = vadd.f32 %v323_v58, %v322_v57 }
  0x92   : > { %v326_v62 = vadd.f32 %v325_v61, %v324_v60 }
  0x94   : > { %v328_v1 = vadd.f32 %v327_v0, %v326_v62 }
  0x96   : > { %v341_v2 = vsel %vm237_vm0, %v328_v1, 0.0  ;;  %v330_v3 = vmul.f32 %v329_v63, %v328_v1 }
  0x97   : > { %342 = vadd.xlane.f32.xlu1 %v341_v2 }
  0x98   : > { %v331_v4 = vsel %vm237_vm0, %v330_v3, 0.0 }
  0x99   : > { %332 = vadd.xlane.f32.xlu0 %v331_v4 }
 0x120   : > { %v343_v5 = vpop.xlane.xlu1 %342 }
 0x121   : > { %v344_v6 = vrot.slane %v343_v5, 4 }
 0x122   : > { %v333_v7 = vpop.xlane.xlu0 %332 }
 0x123   : > { %v345_v8 = vadd.f32 %v344_v6, %v343_v5  ;;  %v334_v9 = vrot.slane %v333_v7, 4 }
 0x125   : > { %v346_v10 = vrot.slane %v345_v8, 2  ;;  %v335_v11 = vadd.f32 %v334_v9, %v333_v7 }
 0x127   : > { %v347_v12 = vadd.f32 %v346_v10, %v345_v8  ;;  %v336_v13 = vrot.slane %v335_v11, 2 }
 0x129   : > { %v337_v14 = vadd.f32 %v336_v13, %v335_v11  ;;  %v348_v15 = vrot.slane %v347_v12, 1 }
 0x12b   : > { %v338_v16 = vrot.slane %v337_v14, 1  ;;  %v349_v18 = vadd.f32 %v348_v15, %v347_v12 }
 0x12d   : > { %v339_v17 = vadd.f32 %v338_v16, %v337_v14 }
 0x12f   : > { %474 = vpush %v339_v17 }
 0x130   : > { %476 = vpush %v349_v18 }
 0x160   : > { %s475_s5 = spop %474 }
 0x161   : > { %v358_v22 = vstv %s475_s5  ;;  %s477_s6 = spop %476 }
 0x162   : > { %v359_v23 = vsel %vm357_vm8, %v358_v22, 0.0  ;;  %v362_v24 = vstv %s477_s6 }
 0x163   : > { %v363_v25 = vsel %vm361_vm9, %v362_v24, 0.0 }
 0x164   : > { %v364_v26 = vadd.f32 %v363_v25, %v359_v23 }
 0x166   : > { %365 = vst [vmem:[%s227_s9] sm:$0xff] %v364_v26 }
 0x167 PF: > { %s13_s14 = sadd.s32 1, %s537_s14   ;;  %s646_s12 = smov %s533_s13 }
 0x168   : > { %p10_p5 = scmp.ge.s32.totalorder %s13_s14, 4   ;;  %s647_s13 = smov %s649_s15 }
 0x16a   :  { %12 = sbr.rel (!%p10_p5) target bundleno = 2 (0x2), region = 65 }

</bundles_post_ra>
